<compile_context>
chip_gen: v5e
topology: v5e:2x2
jax: 0.10.0
libtpu: 0.0.40
codegen_flags: <defaults>
</compile_context>

<pallas_src>
import functools

import jax
import jax.numpy as jnp
from jax.experimental import pallas as pl
from jax.experimental.pallas import tpu as pltpu

GAMMA = 2          # compile-time int; lowered to a plain multiply below
SMOOTH = 1e-4


def _round_up(x, m):
    return ((x + m - 1) // m) * m


def _focal_loss_kernel(logit_ref, target_ref, alpha_ref, out_ref, acc_ref, *,
                       n_valid, tile_n):
    c = pl.program_id(0)              # core (parallel) axis
    j = pl.program_id(1)              # sample-block (reduction) axis
    nj = pl.num_programs(1)

    @pl.when(j == 0)
    def _():
        acc_ref[...] = jnp.zeros_like(acc_ref)

    logits = logit_ref[...].astype(jnp.float32)      # (C, TN)  classes on sublanes
    tgt = target_ref[...]                            # (1, TN)  int32, lane-dense
    alpha = alpha_ref[...].astype(jnp.float32)       # (C, 1)

    # Softmax pieces over the (tiny) class/sublane axis; no full-width divide.
    m = jnp.max(logits, axis=0, keepdims=True)       # (1, TN)
    e = jnp.exp(logits - m)                          # (C, TN)
    denom = jnp.sum(e, axis=0, keepdims=True)        # (1, TN)

    # One-hot select of the target class (no dynamic gather across sublanes).
    class_ids = jax.lax.broadcasted_iota(jnp.int32, logits.shape, 0)   # (C, TN)
    onehot = (class_ids == tgt).astype(jnp.float32)                    # (C, TN)

    num = jnp.sum(e * onehot, axis=0, keepdims=True)          # (1, TN)
    alpha_w = jnp.sum(onehot * alpha, axis=0, keepdims=True)  # (1, TN)

    p_t = num / denom + SMOOTH        # matches reference: add smooth, then log
    logpt = jnp.log(p_t)
    one_m = 1.0 - p_t
    focal = one_m * one_m if GAMMA == 2 else jnp.power(one_m, GAMMA)
    loss = -alpha_w * focal * logpt                  # (1, TN)

    # Mask samples that only exist because of padding N up to the tile grid.
    lane = jax.lax.broadcasted_iota(jnp.int32, (1, tile_n), 1)
    start = (c * nj + j) * tile_n
    loss = jnp.where(start + lane < n_valid, loss, 0.0)

    acc_ref[...] += loss                             # lane-wide vector accumulator

    @pl.when(j == nj - 1)
    def _():
        total = jnp.sum(acc_ref[...])                # one cross-lane reduce per slice
        out_ref[...] = jnp.full((1, 128), total, dtype=jnp.float32)


def multi_focal_loss(logit, target, alpha, *, tile_n=2048, num_cores=2):
    """Focal loss with 'mean' reduction.

    logit:  (N, C) float (f32 or bf16; cast to f32 inside the kernel)
    target: (N,)   int
    alpha:  (C,)   float
    """
    N, C = logit.shape

    # Lane-dense tile: multiple of 128, no larger than needed for this N.
    tile_n = min(tile_n, _round_up(pl.cdiv(N, num_cores), 128))
    tile_n = max(128, _round_up(tile_n, 128))
    n_pad = _round_up(N, num_cores * tile_n)
    blocks_per_core = n_pad // (num_cores * tile_n)

    # Samples on lanes, classes on sublanes (transpose + pad fuse in XLA).
    logit_t = jnp.pad(jnp.transpose(logit, (1, 0)), ((0, 0), (0, n_pad - N)))
    target2d = jnp.pad(target.astype(jnp.int32), (0, n_pad - N)).reshape(1, n_pad)
    alpha2d = alpha.astype(jnp.float32).reshape(C, 1)

    kernel = functools.partial(_focal_loss_kernel, n_valid=N, tile_n=tile_n)

    out = pl.pallas_call(
        kernel,
        out_shape=jax.ShapeDtypeStruct((1, num_cores * 128), jnp.float32),
        grid_spec=pltpu.PrefetchScalarGridSpec(
            num_scalar_prefetch=0,
            grid=(num_cores, blocks_per_core),
            in_specs=[
                pl.BlockSpec((C, tile_n),
                             lambda c, j: (0, c * blocks_per_core + j)),
                pl.BlockSpec((1, tile_n),
                             lambda c, j: (0, c * blocks_per_core + j)),
                pl.BlockSpec((C, 1), lambda c, j: (0, 0)),
            ],
            out_specs=pl.BlockSpec((1, 128), lambda c, j: (0, c)),
            scratch_shapes=[pltpu.VMEM((1, tile_n), jnp.float32)],
        ),
        compiler_params=pltpu.CompilerParams(
            dimension_semantics=("parallel", "arbitrary")),
    )(logit_t, target2d, alpha2d)

    # Each core broadcast its partial sum across its 128-lane output segment.
    partials = out.reshape(num_cores, 128)[:, 0]
    return jnp.sum(partials) / N          # 'mean' reduction


def reference_focal_loss(logit, target, alpha):
    prob = jax.nn.softmax(logit.astype(jnp.float32), axis=1)
    p_t = prob[jnp.arange(logit.shape[0]), target] + SMOOTH
    logpt = jnp.log(p_t)
    alpha_w = alpha[target]
    loss = -alpha_w * jnp.power(1.0 - p_t, GAMMA) * logpt
    return jnp.mean(loss)


if __name__ == "__main__":
    num_class = 4
    N = 16  # e.g. batch=2 * seq=8 flattened sample dim

    key = jax.random.PRNGKey(0)
    k_logit, k_tgt = jax.random.split(key)
    logit = jax.random.normal(k_logit, (N, num_class), dtype=jnp.float32)
    target = jax.random.randint(k_tgt, (N,), 0, num_class, dtype=jnp.int32)

    # Deterministic params: alpha default in the module is ones(num_class) - 0.5
    alpha = jnp.ones((num_class,), dtype=jnp.float32) - 0.5

    out = multi_focal_loss(logit, target, alpha)
    out = jax.block_until_ready(out)

    ref = reference_focal_loss(logit, target, alpha)
    assert jnp.allclose(out, ref, rtol=1e-5, atol=1e-6), (out, ref)

    print("KERNEL_OK")
</pallas_src>

<mosaic_0001>
module attributes {stable_mosaic.version = 11 : i64} {
  func.func @_focal_loss_kernel(%arg0: i32, %arg1: i32, %arg2: memref<4x128xf32, #tpu.memory_space<vmem>>, %arg3: memref<1x128xi32, #tpu.memory_space<vmem>>, %arg4: memref<4x1xf32, #tpu.memory_space<vmem>>, %arg5: memref<1x128xf32, #tpu.memory_space<vmem>>, %arg6: memref<1x128xf32, #tpu.memory_space<vmem>>) attributes {dimension_semantics = [#tpu.dimension_semantics<parallel>, #tpu.dimension_semantics<arbitrary>], iteration_bounds = array<i64: 2, 1>, scalar_prefetch = 0 : i64, scratch_operands = 1 : i64, tpu.core_type = #tpu.core_type<tc>, window_params = [{transform_indices = @transform_0, window_bounds = array<i64: 4, 128>}, {transform_indices = @transform_1, window_bounds = array<i64: 1, 128>}, {pipeline_mode = #tpu.pipeline_mode<synchronous>, transform_indices = @transform_2, window_bounds = array<i64: 4, 1>}, {transform_indices = @transform_3, window_bounds = array<i64: 1, 128>}]} {
    %c0_i32 = arith.constant 0 : i32
    %0 = arith.cmpi eq, %arg1, %c0_i32 : i32
    %1 = arith.extui %0 : i1 to i32
    %c0_i32_0 = arith.constant 0 : i32
    %2 = arith.cmpi ne, %1, %c0_i32_0 : i32
    scf.if %2 {
      %cst_19 = arith.constant 0.000000e+00 : f32
      %52 = vector.broadcast %cst_19 : f32 to vector<1x128xf32>
      %c0_20 = arith.constant 0 : index
      %c0_21 = arith.constant 0 : index
      %53 = vector.load %arg6[%c0_20, %c0_21] : memref<1x128xf32, #tpu.memory_space<vmem>>, vector<1x128xf32>
      tpu.vector_store %arg6[%c0_20, %c0_21], %52 {strides = array<i32>} : memref<1x128xf32, #tpu.memory_space<vmem>>, vector<1x128xf32>,
    } else {
    }
    %c0 = arith.constant 0 : index
    %c0_1 = arith.constant 0 : index
    %3 = vector.load %arg2[%c0, %c0_1] : memref<4x128xf32, #tpu.memory_space<vmem>>, vector<4x128xf32>
    %c0_2 = arith.constant 0 : index
    %c0_3 = arith.constant 0 : index
    %4 = vector.load %arg3[%c0_2, %c0_3] : memref<1x128xi32, #tpu.memory_space<vmem>>, vector<1x128xi32>
    %c0_4 = arith.constant 0 : index
    %c0_5 = arith.constant 0 : index
    %5 = vector.load %arg4[%c0_4, %c0_5] : memref<4x1xf32, #tpu.memory_space<vmem>>, vector<4x1xf32>
    %cst = arith.constant dense<0xFF800000> : vector<128xf32>
    %6 = vector.multi_reduction <maximumf>, %3, %cst [0] : vector<4x128xf32> to vector<128xf32>
    %7 = vector.shape_cast %6 : vector<128xf32> to vector<1x128xf32>
    %8 = vector.broadcast %7 : vector<1x128xf32> to vector<4x128xf32>
    %9 = arith.subf %3, %8 : vector<4x128xf32>
    %10 = math.exp %9 : vector<4x128xf32>
    %cst_6 = arith.constant dense<0.000000e+00> : vector<128xf32>
    %11 = vector.multi_reduction <add>, %10, %cst_6 [0] : vector<4x128xf32> to vector<128xf32>
    %12 = vector.shape_cast %11 : vector<128xf32> to vector<1x128xf32>
    %13 = tpu.iota {dimensions = array<i32: 0>} : vector<4x128xi32>
    %14 = vector.broadcast %4 : vector<1x128xi32> to vector<4x128xi32>
    %15 = arith.cmpi eq, %13, %14 : vector<4x128xi32>
    %16 = arith.extui %15 : vector<4x128xi1> to vector<4x128xi32>
    %17 = arith.sitofp %16 : vector<4x128xi32> to vector<4x128xf32>
    %18 = arith.mulf %10, %17 : vector<4x128xf32>
    %cst_7 = arith.constant dense<0.000000e+00> : vector<128xf32>
    %19 = vector.multi_reduction <add>, %18, %cst_7 [0] : vector<4x128xf32> to vector<128xf32>
    %20 = vector.shape_cast %19 : vector<128xf32> to vector<1x128xf32>
    %21 = vector.broadcast %5 : vector<4x1xf32> to vector<4x128xf32>
    %22 = arith.mulf %17, %21 : vector<4x128xf32>
    %cst_8 = arith.constant dense<0.000000e+00> : vector<128xf32>
    %23 = vector.multi_reduction <add>, %22, %cst_8 [0] : vector<4x128xf32> to vector<128xf32>
    %24 = vector.shape_cast %23 : vector<128xf32> to vector<1x128xf32>
    %25 = arith.divf %20, %12 : vector<1x128xf32>
    %cst_9 = arith.constant 9.99999974E-5 : f32
    %26 = vector.broadcast %cst_9 : f32 to vector<1x128xf32>
    %27 = arith.addf %25, %26 : vector<1x128xf32>
    %28 = math.log %27 : vector<1x128xf32>
    %cst_10 = arith.constant 1.000000e+00 : f32
    %29 = vector.broadcast %cst_10 : f32 to vector<1x128xf32>
    %30 = arith.subf %29, %27 : vector<1x128xf32>
    %31 = arith.mulf %30, %30 : vector<1x128xf32>
    %cst_11 = arith.constant 0.000000e+00 : f32
    %32 = vector.broadcast %cst_11 : f32 to vector<1x128xf32>
    %33 = arith.subf %32, %24 : vector<1x128xf32>
    %34 = arith.mulf %33, %31 : vector<1x128xf32>
    %35 = arith.mulf %34, %28 : vector<1x128xf32>
    %36 = tpu.iota {dimensions = array<i32: 1>} : vector<1x128xi32>
    %c1_i32 = arith.constant 1 : i32
    %37 = arith.muli %arg0, %c1_i32 : i32
    %38 = arith.addi %37, %arg1 : i32
    %c128_i32 = arith.constant 128 : i32
    %39 = arith.muli %38, %c128_i32 : i32
    %40 = vector.broadcast %39 : i32 to vector<1x128xi32>
    %41 = arith.addi %40, %36 : vector<1x128xi32>
    %c16_i32 = arith.constant 16 : i32
    %42 = vector.broadcast %c16_i32 : i32 to vector<1x128xi32>
    %43 = arith.cmpi slt, %41, %42 : vector<1x128xi32>
    %cst_12 = arith.constant 0.000000e+00 : f32
    %44 = vector.broadcast %cst_12 : f32 to vector<1x128xf32>
    %45 = arith.select %43, %35, %44 : vector<1x128xi1>, vector<1x128xf32>
    %c0_13 = arith.constant 0 : index
    %c0_14 = arith.constant 0 : index
    %46 = vector.load %arg6[%c0_13, %c0_14] : memref<1x128xf32, #tpu.memory_space<vmem>>, vector<1x128xf32>
    %47 = arith.addf %46, %45 : vector<1x128xf32>
    %c0_15 = arith.constant 0 : index
    %c0_16 = arith.constant 0 : index
    %48 = vector.load %arg6[%c0_15, %c0_16] : memref<1x128xf32, #tpu.memory_space<vmem>>, vector<1x128xf32>
    tpu.vector_store %arg6[%c0_15, %c0_16], %47 {strides = array<i32>} : memref<1x128xf32, #tpu.memory_space<vmem>>, vector<1x128xf32>,
    %c0_i32_17 = arith.constant 0 : i32
    %49 = arith.cmpi eq, %arg1, %c0_i32_17 : i32
    %50 = arith.extui %49 : i1 to i32
    %c0_i32_18 = arith.constant 0 : i32
    %51 = arith.cmpi ne, %50, %c0_i32_18 : i32
    scf.if %51 {
      %c0_19 = arith.constant 0 : index
      %c0_20 = arith.constant 0 : index
      %52 = vector.load %arg6[%c0_19, %c0_20] : memref<1x128xf32, #tpu.memory_space<vmem>>, vector<1x128xf32>
      %53 = vector.shape_cast %52 : vector<1x128xf32> to vector<1x1x128xf32>
      %cst_21 = arith.constant dense<0.000000e+00> : vector<1xf32>
      %54 = vector.multi_reduction <add>, %53, %cst_21 [1, 2] : vector<1x1x128xf32> to vector<1xf32>
      %55 = vector.shape_cast %54 : vector<1xf32> to vector<1x1x1xf32>
      %56 = vector.extract %55[0, 0, 0] : f32 from vector<1x1x1xf32>
      %57 = vector.broadcast %56 : f32 to vector<1x128xf32>
      %c0_22 = arith.constant 0 : index
      %c0_23 = arith.constant 0 : index
      %58 = vector.load %arg5[%c0_22, %c0_23] : memref<1x128xf32, #tpu.memory_space<vmem>>, vector<1x128xf32>
      tpu.vector_store %arg5[%c0_22, %c0_23], %57 {strides = array<i32>} : memref<1x128xf32, #tpu.memory_space<vmem>>, vector<1x128xf32>,
    } else {
    }
    return
  }
  func.func @transform_0(%arg0: i32, %arg1: i32) -> (i32, i32) {
    %c1_i32 = arith.constant 1 : i32
    %0 = arith.muli %arg0, %c1_i32 : i32
    %1 = arith.addi %0, %arg1 : i32
    %c0_i32 = arith.constant 0 : i32
    %c0_i32_0 = arith.constant 0 : i32
    return %c0_i32, %1 : i32, i32
  }
  func.func @transform_1(%arg0: i32, %arg1: i32) -> (i32, i32) {
    %c1_i32 = arith.constant 1 : i32
    %0 = arith.muli %arg0, %c1_i32 : i32
    %1 = arith.addi %0, %arg1 : i32
    %c0_i32 = arith.constant 0 : i32
    %c0_i32_0 = arith.constant 0 : i32
    return %c0_i32, %1 : i32, i32
  }
  func.func @transform_2(%arg0: i32, %arg1: i32) -> (i32, i32) {
    %c0_i32 = arith.constant 0 : i32
    %c0_i32_0 = arith.constant 0 : i32
    %c0_i32_1 = arith.constant 0 : i32
    return %c0_i32, %c0_i32_0 : i32, i32
  }
  func.func @transform_3(%arg0: i32, %arg1: i32) -> (i32, i32) {
    %c0_i32 = arith.constant 0 : i32
    %c0_i32_0 = arith.constant 0 : i32
    return %c0_i32, %arg0 : i32, i32
  }
}

</mosaic_0001>

<bundles_post_ra>
// kernel: tpu_custom_call.1
= control target key start
LH: loop header
LB: loop body
LE: loop exit
PB: predicated region body
PF: predicated region fallthrough
CT: control target
= control target key end

     0   :  { %8 = vsyncpa [#allocation4], 0  ;;  %s781_s0 = inlined_call_operand.hbm [shape: f32[4,256], index: 0, kind: input, shape index: {}]   ;;  %s782_s1 = inlined_call_operand.vmem [shape: s32[1,256], index: 1, kind: input, shape index: {}]   ;;  %s783_s2 = inlined_call_operand.vmem [shape: f32[4,1], index: 2, kind: input, shape index: {}]   ;;  %s784_s3 = inlined_call_operand.hbm [shape: f32[1,256], index: 3, kind: output, shape index: {}]  }
   0x1   :  { %10 = vsyncpa [#allocation4 + $0x1], 0 }
   0x2   :  { %11 = vsyncpa [#allocation5], 0 }
   0x3   :  { %13 = vsyncpa [#allocation5 + $0x1], 0  ;;  %s647_s12 = smov 0   ;;  %s649_s13 = smov 0  }
   0x4   :  { %s651_s14 = smov 0   ;;  %s653_s15 = smov 0  }
   0x5   :  { %s655_s16 = smov 0   ;;  %s657_s17 = smov 0  }
   0x6 LB: > { %s425_s18 = sadd.s32 4294967295, %s623_s17   ;;  %s426_s19 = sadd.s32 4294967294, %s623_s17   ;;  %s623_s17 = sphi %s657_s17, %s19_s17   ;;  %s619_s16 = sphi %s655_s16, %s793_s16   ;;  %s615_s15 = sphi %s653_s15, %s792_s15   ;;  %s611_s14 = sphi %s651_s14, %s791_s14   ;;  %s607_s13 = sphi %s649_s13, %s790_s13   ;;  %s603_s12 = sphi %s647_s12, %s789_s12  }
   0x7   : > { %s31_s20 = sadd.s32 1, %s619_s16  ;;  %s40_s21 = sadd.s32 1, %s611_s14 }
   0x8   : > { %p33_p0 = scmp.ge.s32.totalorder %s31_s20, 2  ;;  %p47_p1 = scmp.ne.s32.totalorder %s611_s14, %s607_s13 }
   0x9   : > { %p48_p2 = scmp.eq.s32.totalorder %s623_s17, 0  ;;  %p53_p3 = scmp.ne.s32.totalorder %s607_s13, %s603_s12 }
   0xa   : > { %s795_s20 = smov (%p33_p0, %s31_s20), 0  ;;  %p54_p5 = scmp.eq.s32.totalorder %s425_s18, 0 }
   0xb   : > { %p688_p4 = por %p48_p2, %p47_p1  ;;  %s37_s23 = ssub.s32 %s619_s16, %s795_s20 }
   0xc   : > { %p126_p6 = scmp.eq.s32.totalorder %s425_s18, 1  ;;  %p38_p7 = scmp.eq.s32.totalorder %s37_s23, 0 }
   0xd   : > { %p694_p8 = por %p54_p5, %p53_p3  ;;  %p132_p10 = scmp.eq.s32.totalorder %s426_s19, 1 }
   0xe   : > { %p698_p9 = por %p126_p6, %p47_p1  ;;  %p428_p12 = scmp.ge.s32.totalorder %s623_s17, 2 }
   0xf   : > { %s703_s26 = scalar_select %p38_p7, %s611_s14, %s40_s21  }
  0x10   : > { %p705_p11 = por %p132_p10, %p53_p3  ;;  %p451_p13 = scmp.lt.s32.totalorder %s623_s17, 2 }
  0x11   : > { %s155_s28 = sand.u32 1, %s611_s14   ;;  %s430_s30 = sshll.u32 %s619_s16, 2 }
  0x12   : > { %s429_s29 = sshll.u32 %s155_s28, 2  ;;  %s164_s6 = scalar_lea.hbm %s781_s0, %s430_s30 }
  0x13   : > { %s159_s7 = scalar_lea.vmem [#allocation3], %s429_s29  ;;  %s166_s9 = sshll.u32 %s164_s6, 4  ;;  %s167_s9 = int_to_ptr.hbm [resolvable:$true] %s166_s9 }
  0x14   : > { %s168_s8 = sshll.u32 %s159_s7, 4  ;;  %p444_p0 = pnand %p451_p13, %p688_p4  ;;  %s169_s8 = int_to_ptr.vmem [resolvable:$true] %s168_s8 }
  0x15   : > { %p431_p1 = scmp.ge.s32.totalorder %s623_s17, 1  ;;  %p181_p2 = scmp.lt.s32.totalorder %s623_s17, 3 }
  0x16   : > { %s156_s10 = scalar_lea.sflag [#allocation4], %s155_s28 }
  0x17   : > { %446 = dma.hbm_to_vmem [thread:$0]  (!%p444_p0), %s167_s9, 64, %s169_s8, %s156_s10  }
  0x18   : > { %p182_p3 = pnand %p431_p1, %p181_p2 }
  0x19   : > { %s721_s11 = sand.u32 (!%p182_p3), 1, %s607_s13  }
  0x1a   : > { %185 = sbr.rel (%p182_p3) target bundleno = 364 (0x16c), region = 32  ;;  %s432_s18 = sshll.u32 (!%p182_p3), %s721_s11, 2 }
  0x1b   : > { %s188_s19 = scalar_lea.sflag (!%p182_p3), [#allocation4], %s721_s11  ;;  %s191_s21 = scalar_lea.vmem (!%p182_p3), [#allocation3], %s432_s18 }
  0x1f   : > { %594 = dma.done.wait (%p694_p8), %s188_s19, 64  }
  0x20   : > { %596 = vsyncadd (%p694_p8), %s188_s19, 4294967232  ;;  %p220_p4 = scmp.lt.s32.totalorder %s615_s15, 1  ;;  %v625_v0 = vmov 0   ;;  %v626_v1 = vmov 0.0   ;;  %v231_v2 = vld [vmem:[%s783_s2] sm:$0xf]  ;;  %v250_v18 = vlaneseq  ;;  %s337_s7 = scalar_lea.hbm %s784_s3, %s615_s15 }
  0x21   : > { %503 = vset.pattern.permute.xlu0 %v625_v0  ;;  %228 = vst [vmem:[#allocation2] sm:$0x1] %v626_v1  ;;  %vm232_vm0 = vcmask 1043456   ;;  %v229_v3 = vld [vmem:[%s191_s21] sm:$0xf]  ;;  %s434_s24 = sshll.u32 %s615_s15, 7 }
  0x22   : > { %s221_s22 = scalar_select %p220_p4, %s615_s15, 1  ;;  %266 = vperm.xlu0 %503, %v231_v2   ;;  %v233_v4 = vsel %vm232_vm0, %v229_v3, -inf  ;;  %v251_v20 = vshrl.u32 %v250_v18, 7  ;;  %v301_v53 = vand.u32 127, %v250_v18  ;;  %v304_v54 = vstv %s434_s24 }
  0x23   : > { %v234_v5 = vrot.slane %v233_v4, 4  ;;  %vm315_vm7 = vcmask 1040384   ;;  %s217_s8 = scalar_lea.vmem [#allocation6], %s721_s11  ;;  %s341_s10 = sshll.u32 %s337_s7, 4  ;;  %s342_s10 = int_to_ptr.hbm [resolvable:$true] %s341_s10 }
  0x24   : > { %s222_s29 = scalar_lea.vmem %s782_s1, %s221_s22  ;;  %v305_v59 = vadd.s32 %v304_v54, %v301_v53  ;;  %s339_s9 = sshll.u32 %s217_s8, 4  ;;  %s340_s9 = int_to_ptr.vmem [resolvable:$true] %s339_s9 }
  0x25   : > { %v235_v6 = vmax.f32 %v233_v4, %v234_v5  ;;  %v504_v21 = vld [vmem:[%s222_s29] ss:$0 sm:$0xff]  ;;  %s329_s19 = scalar_lea.sflag [#allocation5], %s721_s11  ;;  %s555_s21 = sshra.s32 %s342_s10, 4  ;;  %s556_s21 = int_to_ptr.hbm [resolvable:$true] %s555_s21 }
  0x26   : > { %vm253_vm1 = vcmp.eq.s32.totalorder %v251_v20, %v504_v21  ;;  %vm306_vm6 = vcmp.lt.s32.totalorder %v305_v59, 16  ;;  %s557_s22 = scalar_lea.hbm %s556_s21, 1  ;;  %s561_s15 = scalar_lea.hbm %s784_s3, 2 }
  0x27   : > { %v236_v7 = vrot.slane %v235_v6, 2  ;;  %v433_v24 = vsel %vm253_vm1, 1.0, %v626_v1  ;;  %p558_p5 = scmp.ne.s32.totalorder %s556_s21, %s557_s22  ;;  %p562_p8 = scmp.lt.s32.totalorder %s556_s21, %s784_s3 }
  0x28   : > { %v308_v0 = vld [vmem:[#allocation2] sm:$0x1]  ;;  %p563_p10 = scmp.lt.s32.totalorder %s561_s15, %s557_s22 }
  0x29   : > { %v237_v8 = vmax.f32 %v235_v6, %v236_v7  ;;  %p559_p6 = pnand %p558_p5, %p698_p9 }
  0x2a   : > { %p564_p13 = por %p563_p10, %p562_p8 }
  0x2b   : > { %v238_v9 = vrot.slane %v237_v8, 1  ;;  %p560_p7 = pneg %p559_p6 }
  0x2d   : > { %v239_v10 = vmax.f32 %v237_v8, %v238_v9  ;;  %p565_p0 = pnand %p564_p13, %p560_p7 }
  0x2f   : > { %v240_v11 = vsub.f32 %v229_v3, %v239_v10 }
  0x31   : > { %v241_v12 = vmul.f32 1.442695, %v240_v11 }
  0x33   : > { %505 = vpow2.f32 %v241_v12 }
  0x39   : > { %v506_v13 = vpop.eup %505 }
  0x3a   : > { %v243_v14 = vsel %vm232_vm0, %v506_v13, 0.0  ;;  %v256_v25 = vmul.f32 %v506_v13, %v433_v24 }
  0x3b   : > { %v244_v15 = vrot.slane %v243_v14, 4 }
  0x3c   : > { %v257_v26 = vsel %vm232_vm0, %v256_v25, 0.0 }
  0x3d   : > { %v245_v16 = vadd.f32 %v244_v15, %v243_v14  ;;  %v258_v28 = vrot.slane %v257_v26, 4 }
  0x3f   : > { %v246_v17 = vrot.slane %v245_v16, 2  ;;  %v259_v30 = vadd.f32 %v258_v28, %v257_v26 }
  0x41   : > { %v247_v19 = vadd.f32 %v246_v17, %v245_v16  ;;  %v260_v32 = vrot.slane %v259_v30, 2 }
  0x43   : > { %v248_v22 = vrot.slane %v247_v19, 1  ;;  %v261_v34 = vadd.f32 %v260_v32, %v259_v30 }
  0x45   : > { %v249_v23 = vadd.f32 %v248_v22, %v247_v19  ;;  %v262_v38 = vrot.slane %v261_v34, 1 }
  0x47   : > { %507 = vrcp.f32 %v249_v23  ;;  %vm282_vm2 = vweird.f32 %v249_v23  ;;  %v288_v35 = vand.u32 2147483648, %v249_v23  ;;  %v286_v37 = vand.u32 2147483647, %v249_v23 }
  0x48   : > { %v263_v41 = vadd.f32 %v262_v38, %v261_v34 }
  0x49   : > { %v289_v39 = vor.u32 1.1754944e-38, %v288_v35  ;;  %vm287_vm5 = vcmp.eq.f32.partialorder %v286_v37, 8.507059e+37 }
  0x4d   : > { %v508_v27 = vpop.eup %507 }
  0x4e   : > { %v278_v29 = vmul.f32 %v508_v27, %v249_v23  ;;  %vm283_vm3 = vweird.f32 %v508_v27 }
  0x4f   : > { %vm284_vm4 = vmor %vm282_vm2, %vm283_vm3 }
  0x50   : > { %v279_v31 = vsub.f32 1.0, %v278_v29 }
  0x52   : > { %v280_v33 = vmul.f32 %v508_v27, %v279_v31 }
  0x54   : > { %v281_v36 = vadd.f32 %v508_v27, %v280_v33 }
  0x56   : > { %v285_v40 = vsel %vm284_vm4, %v508_v27, %v281_v36 }
  0x57   : > { %v290_v42 = vsel %vm287_vm5, %v289_v39, %v285_v40 }
  0x58   : > { %v291_v43 = vmul.f32 %v290_v42, %v263_v41 }
  0x5a   : > { %v292_v47 = vadd.f32 0.0001, %v291_v43 }
  0x5c   : > { %509 = vlog2.f32 %v292_v47  ;;  %v295_v52 = vsub.f32 1.0, %v292_v47 }
  0x5e   : > { %v296_v58 = vmul.f32 %v295_v52, %v295_v52 }
  0x62   : > { %v510_v56 = vpop.eup %509 }
  0x63   : > { %v294_v60 = vmul.f32 0.6931472, %v510_v56 }
  0x94   : > { %v267_v44 = vpop.permute.xlu0 %266 }
  0x95   : > { %v269_v45 = vmul.f32 %v433_v24, %v267_v44 }
  0x97   : > { %v270_v46 = vsel %vm232_vm0, %v269_v45, 0.0 }
  0x98   : > { %v271_v48 = vrot.slane %v270_v46, 4 }
  0x9a   : > { %v272_v49 = vadd.f32 %v271_v48, %v270_v46 }
  0x9c   : > { %v273_v50 = vrot.slane %v272_v49, 2 }
  0x9e   : > { %v274_v51 = vadd.f32 %v273_v50, %v272_v49 }
  0xa0   : > { %v275_v55 = vrot.slane %v274_v51, 1 }
  0xa2   : > { %v276_v57 = vadd.f32 %v275_v55, %v274_v51 }
  0xa4   : > { %v297_v61 = vsub.f32 0.0, %v276_v57 }
  0xa6   : > { %v298_v62 = vmul.f32 %v297_v61, %v296_v58 }
  0xa8   : > { %v299_v63 = vmul.f32 %v298_v62, %v294_v60 }
  0xaa   : > { %v307_v1 = vsel %vm306_vm6, %v299_v63, 0.0 }
  0xab   : > { %v309_v2 = vadd.f32 %v308_v0, %v307_v1 }
  0xad   : > { %310 = vst [vmem:[#allocation2] sm:$0x1] %v309_v2 }
  0xb4   : > { %v314_v3 = vld [vmem:[#allocation2] sm:$0x1] }
  0xb5   : > { %v316_v4 = vsel %vm315_vm7, %v314_v3, 0.0 }
  0xb6   : > { %317 = vadd.xlane.f32.xlu0 %v316_v4 }
 0x129   : > { %v318_v5 = vpop.xlane.xlu0 %317 }
 0x12a   : > { %v319_v6 = vrot.slane %v318_v5, 4 }
 0x12c   : > { %v320_v7 = vadd.f32 %v319_v6, %v318_v5 }
 0x12e   : > { %v321_v8 = vrot.slane %v320_v7, 2 }
 0x130   : > { %v322_v9 = vadd.f32 %v321_v8, %v320_v7 }
 0x132   : > { %v323_v10 = vrot.slane %v322_v9, 1 }
 0x134   : > { %v324_v11 = vadd.f32 %v323_v10, %v322_v9 }
 0x136   : > { %437 = vpush %v324_v11 }
 0x167   : > { %s438_s18 = spop %437 }
 0x168   : > { %v326_v12 = vstv %s438_s18 }
 0x169   : > { %327 = vst [vmem:[%s217_s8] sm:$0x1] %v326_v12 }
 0x16a   : > { %568 = shalt.err (!%p565_p0)
}
 0x16b   : > { %441 = dma.vmem_to_hbm [thread:$0]  (%p698_p9), %s340_s9, 16, %s342_s10, %s329_s19  }
 0x16c PF: > { %s353_s11 = sand.u32 1, %s603_s12   ;;  %p448_p1 = pnand %p428_p12, %p705_p11 }
 0x16d   : > { %s354_s4 = scalar_lea.sflag [#allocation5], %s353_s11 }
 0x16e   : > { %p449_p2 = pneg %p448_p1 }
 0x170   : > { %598 = dma.done.wait (%p449_p2), %s354_s4, 16  }
 0x171   : > { %600 = vsyncadd (%p449_p2), %s354_s4, 4294967280  ;;  %s19_s17 = sadd.s32 1, %s623_s17   ;;  %s789_s12 = smov %s607_s13 }
 0x172   : > { %p16_p3 = scmp.ge.s32.totalorder %s19_s17, 4   ;;  %s790_s13 = smov %s611_s14 }
 0x173   : > { %s791_s14 = smov %s703_s26  ;;  %s792_s15 = smov %s619_s16 }
 0x174   : > { %s793_s16 = smov %s795_s20  ;;  %18 = sbr.rel (!%p16_p3) target bundleno = 6 (0x6), region = 88 }
 0x179   :  { %359 = vsyncpa [#allocation4], 1 }
 0x17a   :  { %361 = vsyncpa [#allocation4 + $0x1], 1 }
 0x17b   :  { %362 = vsyncpa [#allocation5], 1 }
 0x17c   :  { %364 = vsyncpa [#allocation5 + $0x1], 1 }

</bundles_post_ra>
